<compile_context>
chip_gen: v6e
topology: v6e:2x2x1
jax: 0.10.0
libtpu: 0.0.40
codegen_flags: <defaults>
</compile_context>

<pallas_src>
import math

import jax
import jax.numpy as jnp
from jax.experimental import pallas as pl
from jax.experimental.pallas import tpu as pltpu


def _sinusoidal_table(n, d_model):
    """Matches the torch buffer construction in __init__ (sin on even cols, cos on odd cols)."""
    pos = jnp.arange(n, dtype=jnp.float32)[:, None]
    div = jnp.exp(
        jnp.arange(0, d_model, 2, dtype=jnp.float32) * (-(math.log(10000.0) / d_model))
    )
    enc = jnp.zeros((n, d_model), jnp.float32)
    enc = enc.at[:, 0::2].set(jnp.sin(pos * div))
    enc = enc.at[:, 1::2].set(jnp.cos(pos * div))
    return enc


def _round_up(n, m):
    return (n + m - 1) // m * m


def _fused_embed_kernel(lhs_ref, rhs_ref, o_ref):
    # One MXU contraction per M tile: projection + agent gather + pos enc + bias, all fused.
    o_ref[...] = jnp.dot(
        lhs_ref[...], rhs_ref[...], preferred_element_type=jnp.float32
    ).astype(o_ref.dtype)


def fixed_delta_embedding(x, xid, w_t, bias, pos_table, agent_table,
                          *, block_m=256, compute_dtype=jnp.bfloat16):
    """x: [B,T,Din] f32, xid: [B,T] int -> [B,T,D] f32 (eval-mode forward)."""
    B, T, Din = x.shape
    D = w_t.shape[1]
    A = agent_table.shape[0]
    M = B * T
    assert T <= pos_table.shape[0], "sequence longer than positional table"

    # ---- wrapper precompute (plain XLA, fused & cheap) ---------------------------------
    ids = xid.reshape(M).astype(jnp.int32) % A                     # flattened-table lookup
    oh_agent = ids[:, None] == jnp.arange(A, dtype=jnp.int32)[None, :]      # (M, A)
    t_idx = jnp.arange(M, dtype=jnp.int32) % T                     # row m <-> (b=m//T, t=m%T)
    oh_pos = t_idx[:, None] == jnp.arange(T, dtype=jnp.int32)[None, :]      # (M, T)

    K = Din + A + T
    lhs = jnp.concatenate(
        [x.reshape(M, Din).astype(compute_dtype),
         oh_agent.astype(compute_dtype),
         oh_pos.astype(compute_dtype)],
        axis=-1)                                                   # (M, K)
    rhs = jnp.concatenate(
        [w_t, agent_table, pos_table[:T] + bias[None, :]],         # bias folded into pos rows
        axis=0).astype(compute_dtype)                              # (K, D)

    # ---- tile the M axis (sublane-aligned tiles, lane-dense D output) ------------------
    tm = min(block_m, _round_up(M, 8))
    m_pad = _round_up(M, tm)
    if m_pad != M:
        lhs = jnp.pad(lhs, ((0, m_pad - M), (0, 0)))
    grid = (m_pad // tm,)

    out = pl.pallas_call(
        _fused_embed_kernel,
        out_shape=jax.ShapeDtypeStruct((m_pad, D), jnp.float32),
        grid=grid,
        in_specs=[
            pl.BlockSpec((tm, K), lambda i: (i, 0)),   # LHS: one M tile per grid step
            # RHS is grid-invariant (index map constant). It is tiny here; at larger D/K it
            # would be a candidate for single-buffering (pipeline_mode=pl.Buffered(1)).
            pl.BlockSpec((K, D), lambda i: (0, 0)),
        ],
        out_specs=pl.BlockSpec((tm, D), lambda i: (i, 0)),
        compiler_params=pltpu.CompilerParams(
            dimension_semantics=("parallel",),          # M tiles shard across v7x's 2 TCs
            vmem_limit_bytes=32 * 1024 * 1024,
        ),
    )(lhs, rhs)

    return out[:M].reshape(B, T, D)


if __name__ == "__main__":
    # Small shapes consistent with the module's forward.
    B, T, DIN, D_MODEL, MAX_LEN, MAX_IDS = 2, 8, 32, 128, 16, 10

    key = jax.random.PRNGKey(0)
    k1, k2, k3, k4 = jax.random.split(key, 4)

    x = jax.random.normal(k1, (B, T, DIN), dtype=jnp.float32)
    xid = jax.random.randint(k2, (B, T), 0, MAX_IDS, dtype=jnp.int32)

    # Deterministic nn.Linear(input_dim, d_model)-style params.
    bound = 1.0 / math.sqrt(DIN)
    w_t = jax.random.uniform(k3, (DIN, D_MODEL), jnp.float32, -bound, bound)  # == weight.T
    bias = jax.random.uniform(k4, (D_MODEL,), jnp.float32, -bound, bound)

    pos_table = _sinusoidal_table(MAX_LEN, D_MODEL)      # registered buffer pos_encoding[0]
    agent_table = _sinusoidal_table(MAX_IDS, D_MODEL)    # registered buffer agent_encoding[0]

    # Plain-JAX reference (dropout in eval mode == identity).
    ref = x @ w_t + bias + pos_table[:T][None] + agent_table[xid % MAX_IDS]

    # Exact-precision path (f32 operands).
    out_f32 = jax.block_until_ready(
        fixed_delta_embedding(x, xid, w_t, bias, pos_table, agent_table,
                              compute_dtype=jnp.float32))
    assert out_f32.shape == (B, T, D_MODEL), out_f32.shape
    assert jnp.allclose(out_f32, ref, atol=1e-4, rtol=1e-4), \
        float(jnp.max(jnp.abs(out_f32 - ref)))

    # bf16-operand path (v6e/v7x MXU fast path, f32 accumulation).
    out_bf16 = jax.block_until_ready(
        fixed_delta_embedding(x, xid, w_t, bias, pos_table, agent_table,
                              compute_dtype=jnp.bfloat16))
    assert jnp.allclose(out_bf16, ref, atol=1e-1, rtol=1e-1), \
        float(jnp.max(jnp.abs(out_bf16 - ref)))

    print("KERNEL_OK")
</pallas_src>

<mosaic_0001>
module attributes {stable_mosaic.version = 11 : i64} {
  func.func @_fused_embed_kernel(%arg0: i32, %arg1: memref<16x50xf32, #tpu.memory_space<vmem>>, %arg2: memref<50x128xf32, #tpu.memory_space<vmem>>, %arg3: memref<16x128xf32, #tpu.memory_space<vmem>>) attributes {dimension_semantics = [#tpu.dimension_semantics<parallel>], iteration_bounds = array<i64: 1>, scalar_prefetch = 0 : i64, scratch_operands = 0 : i64, tpu.core_type = #tpu.core_type<tc>, window_params = [{transform_indices = @transform_0, window_bounds = array<i64: 16, 50>}, {pipeline_mode = #tpu.pipeline_mode<synchronous>, transform_indices = @transform_1, window_bounds = array<i64: 50, 128>}, {transform_indices = @transform_2, window_bounds = array<i64: 16, 128>}]} {
    %c0 = arith.constant 0 : index
    %c0_0 = arith.constant 0 : index
    %0 = vector.load %arg1[%c0, %c0_0] : memref<16x50xf32, #tpu.memory_space<vmem>>, vector<16x50xf32>
    %c0_1 = arith.constant 0 : index
    %c0_2 = arith.constant 0 : index
    %1 = vector.load %arg2[%c0_1, %c0_2] : memref<50x128xf32, #tpu.memory_space<vmem>>, vector<50x128xf32>
    %cst = arith.constant dense<0.000000e+00> : vector<16x128xf32>
    %2 = tpu.matmul %0, %1, %cst {dimension_numbers = #tpu.dot_dimension_numbers<[1], [0], [0], [1], [0, 0, 1, 1], [], []>} : vector<16x50xf32>, vector<50x128xf32>, vector<16x128xf32> -> vector<16x128xf32>
    %c0_3 = arith.constant 0 : index
    %c0_4 = arith.constant 0 : index
    %3 = vector.load %arg3[%c0_3, %c0_4] : memref<16x128xf32, #tpu.memory_space<vmem>>, vector<16x128xf32>
    tpu.vector_store %arg3[%c0_3, %c0_4], %2 {strides = array<i32>} : memref<16x128xf32, #tpu.memory_space<vmem>>, vector<16x128xf32>,
    return
  }
  func.func @transform_0(%arg0: i32) -> (i32, i32) {
    %c0_i32 = arith.constant 0 : i32
    %c0_i32_0 = arith.constant 0 : i32
    return %arg0, %c0_i32 : i32, i32
  }
  func.func @transform_1(%arg0: i32) -> (i32, i32) {
    %c0_i32 = arith.constant 0 : i32
    %c0_i32_0 = arith.constant 0 : i32
    %c0_i32_1 = arith.constant 0 : i32
    return %c0_i32, %c0_i32_0 : i32, i32
  }
  func.func @transform_2(%arg0: i32) -> (i32, i32) {
    %c0_i32 = arith.constant 0 : i32
    %c0_i32_0 = arith.constant 0 : i32
    return %arg0, %c0_i32 : i32, i32
  }
}

</mosaic_0001>

<bundles_post_ra>
// kernel: tpu_custom_call.1
= control target key start
LH: loop header
LB: loop body
LE: loop exit
PB: predicated region body
PF: predicated region fallthrough
CT: control target
= control target key end

     0   :  { %7 = vsyncpa [#allocation3], 0  ;;  %s295_s0 = inlined_call_operand.hbm [shape: f32[16,50], index: 0, kind: input, shape index: {}]   ;;  %s296_s1 = inlined_call_operand.hbm [shape: f32[50,128], index: 1, kind: input, shape index: {}]   ;;  %s297_s2 = inlined_call_operand.hbm [shape: f32[16,128], index: 2, kind: output, shape index: {}]  }
   0x1   :  { %8 = vsyncpa [#allocation6], 0 }
   0x2   :  { %9 = vsyncpa [#allocation4], 0  ;;  %s255_s9 = smov [#allocation2]  }
   0x3   :  { %s15_s10 = sshll.u32 %s255_s9, 4  ;;  %s16_s10 = int_to_ptr.vmem [resolvable:$true] %s15_s10 }
   0x4   :  { %s197_s11 = scalar_lea.vmem %s16_s10, 256  ;;  %p202_p1 = scmp.lt.s32.totalorder %s16_s10, %s16_s10 }
   0x5   :  { %p198_p0 = scmp.ne.s32.totalorder %s16_s10, %s197_s11  ;;  %p203_p2 = scmp.lt.s32.totalorder %s197_s11, %s197_s11 }
   0x7   :  { %p204_p3 = por %p203_p2, %p202_p1 }
   0x9   :  { %p205_p4 = pnand %p204_p3, %p198_p0 }
   0xb   :  { %208 = shalt.err (!%p205_p4)
}
   0xc   :  { %s256_s12 = smov 128   ;;  %s257_s13 = smov 8  }
   0xd   :  { %21 = dma.hbm_to_vmem [thread:$0]  %s295_s0, 256, %s16_s10, [#allocation3], %s256_s12, %s256_s12, %s257_s13  }
   0xe   :  { %s258_s16 = smov [#allocation5]  }
   0xf   :  { %s27_s17 = sshll.u32 %s258_s16, 4  ;;  %s28_s17 = int_to_ptr.vmem [resolvable:$true] %s27_s17 }
  0x10   :  { %s217_s18 = scalar_lea.vmem %s28_s17, 896  ;;  %p222_p6 = scmp.lt.s32.totalorder %s28_s17, %s28_s17 }
  0x11   :  { %p218_p5 = scmp.ne.s32.totalorder %s28_s17, %s217_s18  ;;  %p223_p7 = scmp.lt.s32.totalorder %s217_s18, %s217_s18 }
  0x13   :  { %p224_p8 = por %p223_p7, %p222_p6 }
  0x15   :  { %p225_p9 = pnand %p224_p8, %p218_p5 }
  0x17   :  { %228 = shalt.err (!%p225_p9)
}
  0x18   :  { %33 = dma.hbm_to_vmem [thread:$0]  %s296_s1, 896, %s28_s17, [#allocation6], %s256_s12, %s256_s12, %s257_s13  }
  0x19   :  { %249 = dma.done.wait [#allocation3], 256  }
  0x1a   :  { %250 = vsyncadd [#allocation3], 4294967040 }
  0x1b   :  { %251 = dma.done.wait [#allocation6], 896  }
  0x1c   :  { %252 = vsyncadd [#allocation6], 4294966400  ;;  %vm56_vm0 = vcmask 1041408   ;;  %v48_v0 = vld [vmem:[#allocation5 + $0x30] sm:$0x3]  ;;  %v47_v1 = vld [vmem:[#allocation5 + $0x28] sm:$0xff] }
  0x1d   :  { %vm49_vm1 = vcmask 408576   ;;  %167 = vmatprep.subr.msk.mxu0 %vm56_vm0, %v48_v0  ;;  %v46_v2 = vld [vmem:[#allocation5 + $0x20] sm:$0xff]  ;;  %v40_v3 = vld [vmem:[#allocation2] sm:$0xff]  ;;  %v45_v4 = vld [vmem:[#allocation5 + $0x18] sm:$0xff]  ;;  %s259_s0 = smov [#allocation7]  }
  0x1e   :  { %168 = vmatpush3.msk.msra.mxu0 %vm56_vm0, %v48_v0  ;;  %181 = vmatprep.mubr.msk.f32.mxu0 %vm49_vm1, %v40_v3  ;;  %v44_v5 = vld [vmem:[#allocation5 + $0x10] sm:$0xff]  ;;  %v43_v6 = vld [vmem:[#allocation5 + $0x8] sm:$0xff]  ;;  %v42_v7 = vld [vmem:[#allocation5] sm:$0xff]  ;;  %s142_s1 = sshll.u32 %s259_s0, 4  ;;  %s143_s1 = int_to_ptr.vmem [resolvable:$true] %s142_s1 }
  0x1f   :  { %169 = vmatprep.subr.mxu0 %v47_v1  ;;  %v41_v8 = vld [vmem:[#allocation2 + $0x8] sm:$0xff]  ;;  %s229_s21 = scalar_lea.vmem %s143_s1, 256  ;;  %p234_p11 = scmp.lt.s32.totalorder %s143_s1, %s143_s1 }
  0x20   :  { %170 = vmatpush3.msra.mxu0 %v47_v1  ;;  %p230_p10 = scmp.ne.s32.totalorder %s143_s1, %s229_s21  ;;  %p235_p12 = scmp.lt.s32.totalorder %s229_s21, %s229_s21 }
  0x21   :  { %171 = vmatprep.subr.mxu0 %v46_v2 }
  0x22   :  { %172 = vmatpush3.msra.mxu0 %v46_v2  ;;  %p236_p13 = por %p235_p12, %p234_p11 }
  0x23   :  { %173 = vmatprep.subr.mxu0 %v45_v4 }
  0x24   :  { %174 = vmatpush3.msra.mxu0 %v45_v4  ;;  %p237_p0 = pnand %p236_p13, %p230_p10 }
  0x25   :  { %175 = vmatprep.subr.mxu0 %v44_v5 }
  0x26   :  { %176 = vmatpush3.msra.mxu0 %v44_v5 }
  0x27   :  { %177 = vmatprep.subr.mxu0 %v43_v6 }
  0x28   :  { %178 = vmatpush3.msra.mxu0 %v43_v6 }
  0x29   :  { %179 = vmatprep.subr.mxu0 %v42_v7 }
  0x2a   :  { %180 = vmatpush3.msra.mxu0 %v42_v7 }
  0x2b   :  { %182 = vmatmul.mubr.msk.f32.vlgmr.msra.gmra.mxu0 %vm49_vm1, %v41_v8 }
  0xeb   :  { %v183_v9 = vpop.f32.mrf.mxu0 }
  0xec   :  { %136 = vst [vmem:[#allocation7 + $0x8] sm:$0xff] %v183_v9 }
  0xed   :  { %v126_v10 = vpop.f32.mrf.mxu0 }
  0xee   :  { %135 = vst [vmem:[#allocation7] sm:$0xff] %v126_v10 }
  0xef   :  { %240 = shalt.err (!%p237_p0)
}
  0xf0   :  { %148 = dma.vmem_to_hbm [thread:$0]  %s143_s1, 256, %s297_s2, [#allocation4], %s256_s12, %s256_s12, %s257_s13  }
  0xf1   :  { %253 = dma.done.wait [#allocation4], 256  }
  0xf2   :  { %254 = vsyncadd [#allocation4], 4294967040 }
  0xf3   :  { %152 = vsyncpa [#allocation3], 1 }
  0xf4   :  { %153 = vsyncpa [#allocation6], 1 }
  0xf5   :  { %154 = vsyncpa [#allocation4], 1 }

</bundles_post_ra>
